<compile_context>
chip_gen: v5e
topology: v5e:2x2
jax: 0.10.0
libtpu: 0.0.40
codegen_flags: <defaults>
</compile_context>

<pallas_src>
import jax
import jax.numpy as jnp
from jax.experimental import pallas as pl
from jax.experimental.pallas import tpu as pltpu


def _norm_relu_kernel(x_ref, o_ref):
    # x_ref / o_ref: (1, C, t_hw) tile in VMEM. Reduction over axis=1 (channels,
    # which live on sublanes); each lane column is independent, so a padded
    # (partial) last lane tile cannot contaminate valid outputs.
    x = x_ref[...]
    r = jnp.maximum(x, 0).astype(jnp.float32)          # ReLU (VPU) -> f32 accum
    s = jnp.sum(r, axis=1, keepdims=True)              # (1, 1, t_hw), XLU reduce
    inv = pl.reciprocal(s + 1e-8, approx=True)         # EUP slot (free-ish)
    o_ref[...] = (r * inv).astype(o_ref.dtype)


def _choose_lane_tile(S, C, itemsize, target_bytes=2 << 20):
    """Pick the lane (last-axis) tile: full extent if small, else a multiple of
    128 sized so one (C, t) tile is ~target_bytes."""
    max_lanes = max(128, target_bytes // max(1, C * itemsize))
    if S <= max_lanes:
        return S                      # full extent: always layout-legal
    return max(128, (max_lanes // 128) * 128)


def norm_relu_3d(x3, *, block_lanes=None):
    """NormReLU over axis=1 of a 3-D array (B, C, S); S is the lane axis."""
    B, C, S = x3.shape
    itemsize = jnp.dtype(x3.dtype).itemsize
    if block_lanes is None:
        block_lanes = _choose_lane_tile(S, C, itemsize)
    block_lanes = min(block_lanes, S)
    if block_lanes < S:
        assert block_lanes % 128 == 0, (
            "lane tile must be a multiple of 128 unless it spans the full axis")
    n_lane_tiles = pl.cdiv(S, block_lanes)

    return pl.pallas_call(
        _norm_relu_kernel,
        out_shape=jax.ShapeDtypeStruct((B, C, S), x3.dtype),
        grid_spec=pltpu.PrefetchScalarGridSpec(
            num_scalar_prefetch=0,
            grid=(B, n_lane_tiles),
            in_specs=[pl.BlockSpec((1, C, block_lanes), lambda b, j: (b, 0, j))],
            out_specs=pl.BlockSpec((1, C, block_lanes), lambda b, j: (b, 0, j)),
        ),
        compiler_params=pltpu.CompilerParams(
            dimension_semantics=("parallel", "parallel"),
        ),
    )(x3)


def norm_relu_nchw(x, dim=1, *, block_lanes=None):
    """NormReLU matching the PyTorch module on NCHW input, reduction over dim=1.

    Reshape NCHW -> (N, C, H*W) is contiguous (metadata-only): no transpose,
    no extra HBM passes.
    """
    assert dim == 1, "this wrapper implements the channel-reduction (dim=1) case"
    N, C, H, W = x.shape
    x3 = x.reshape(N, C, H * W)
    y3 = norm_relu_3d(x3, block_lanes=block_lanes)
    return y3.reshape(N, C, H, W)


def _reference(x, dim=1):
    r = jnp.maximum(x, 0.0)
    s = jnp.sum(r, axis=dim, keepdims=True)
    return r / (1e-8 + s)


if __name__ == "__main__":
    key = jax.random.PRNGKey(0)
    # Small NCHW input consistent with the slot-attention decoder usage.
    x = jax.random.normal(key, (2, 4, 16, 16), dtype=jnp.float32)

    y = jax.block_until_ready(norm_relu_nchw(x, dim=1))
    y_ref = _reference(x, dim=1)
    assert y.shape == x.shape
    # rtol loosened slightly for the approximate (EUP) reciprocal.
    assert jnp.allclose(y, y_ref, atol=1e-6, rtol=5e-3), "mismatch vs reference"

    # Also exercise the lane-tiled path (multiple lane tiles + partial last tile).
    x2 = jax.random.normal(jax.random.PRNGKey(0), (2, 4, 16, 18), dtype=jnp.float32)
    y2 = jax.block_until_ready(norm_relu_nchw(x2, dim=1, block_lanes=128))
    assert jnp.allclose(y2, _reference(x2, dim=1), atol=1e-6, rtol=5e-3), \
        "mismatch vs reference (tiled path)"

    print("KERNEL_OK")
</pallas_src>

<mosaic_0001>
module attributes {stable_mosaic.version = 11 : i64} {
  func.func @_norm_relu_kernel(%arg0: i32, %arg1: i32, %arg2: memref<1x4x256xf32, #tpu.memory_space<vmem>>, %arg3: memref<1x4x256xf32, #tpu.memory_space<vmem>>) attributes {dimension_semantics = [#tpu.dimension_semantics<parallel>, #tpu.dimension_semantics<parallel>], iteration_bounds = array<i64: 2, 1>, scalar_prefetch = 0 : i64, scratch_operands = 0 : i64, tpu.core_type = #tpu.core_type<tc>, window_params = [{transform_indices = @transform_0, window_bounds = array<i64: 1, 4, 256>}, {transform_indices = @transform_1, window_bounds = array<i64: 1, 4, 256>}]} {
    %c0 = arith.constant 0 : index
    %c0_0 = arith.constant 0 : index
    %c0_1 = arith.constant 0 : index
    %0 = vector.load %arg2[%c0, %c0_0, %c0_1] : memref<1x4x256xf32, #tpu.memory_space<vmem>>, vector<1x4x256xf32>
    %cst = arith.constant 0.000000e+00 : f32
    %1 = vector.broadcast %cst : f32 to vector<1x4x256xf32>
    %2 = arith.maximumf %0, %1 : vector<1x4x256xf32>
    %cst_2 = arith.constant dense<0.000000e+00> : vector<1x256xf32>
    %3 = vector.multi_reduction <add>, %2, %cst_2 [1] : vector<1x4x256xf32> to vector<1x256xf32>
    %4 = vector.shape_cast %3 : vector<1x256xf32> to vector<1x1x256xf32>
    %cst_3 = arith.constant 9.99999993E-9 : f32
    %5 = vector.broadcast %cst_3 : f32 to vector<1x1x256xf32>
    %6 = arith.addf %4, %5 : vector<1x1x256xf32>
    %7 = tpu.reciprocal %6 {approx = true} : vector<1x1x256xf32> -> vector<1x1x256xf32>
    %8 = vector.broadcast %7 : vector<1x1x256xf32> to vector<1x4x256xf32>
    %9 = arith.mulf %2, %8 : vector<1x4x256xf32>
    %c0_4 = arith.constant 0 : index
    %c0_5 = arith.constant 0 : index
    %c0_6 = arith.constant 0 : index
    %10 = vector.load %arg3[%c0_4, %c0_5, %c0_6] : memref<1x4x256xf32, #tpu.memory_space<vmem>>, vector<1x4x256xf32>
    tpu.vector_store %arg3[%c0_4, %c0_5, %c0_6], %9 {strides = array<i32>} : memref<1x4x256xf32, #tpu.memory_space<vmem>>, vector<1x4x256xf32>,
    return
  }
  func.func @transform_0(%arg0: i32, %arg1: i32) -> (i32, i32, i32) {
    %c0_i32 = arith.constant 0 : i32
    %c0_i32_0 = arith.constant 0 : i32
    return %arg0, %c0_i32, %arg1 : i32, i32, i32
  }
  func.func @transform_1(%arg0: i32, %arg1: i32) -> (i32, i32, i32) {
    %c0_i32 = arith.constant 0 : i32
    %c0_i32_0 = arith.constant 0 : i32
    return %arg0, %c0_i32, %arg1 : i32, i32, i32
  }
}

</mosaic_0001>

<bundles_post_ra>
// kernel: tpu_custom_call.1
= control target key start
LH: loop header
LB: loop body
LE: loop exit
PB: predicated region body
PF: predicated region fallthrough
CT: control target
= control target key end

     0   :  { %6 = vsyncpa [#allocation3], 0  ;;  %s626_s0 = inlined_call_operand.hbm [shape: f32[2,4,256], index: 0, kind: input, shape index: {}]   ;;  %s627_s1 = inlined_call_operand.hbm [shape: f32[2,4,256], index: 1, kind: output, shape index: {}]  }
   0x1   :  { %8 = vsyncpa [#allocation3 + $0x1], 0 }
   0x2   :  { %9 = vsyncpa [#allocation4], 0 }
   0x3   :  { %11 = vsyncpa [#allocation4 + $0x1], 0  ;;  %s499_s6 = smov 0   ;;  %s501_s7 = smov 0  }
   0x4   :  { %s503_s8 = smov 0   ;;  %s505_s9 = smov 0  }
   0x5   :  { %s507_s10 = smov 0   ;;  %s509_s11 = smov 0  }
   0x6 LB: > { %s292_s12 = sadd.s32 4294967295, %s487_s11   ;;  %s293_s13 = sadd.s32 4294967294, %s487_s11   ;;  %s487_s11 = sphi %s509_s11, %s17_s11   ;;  %s483_s10 = sphi %s507_s10, %s636_s10   ;;  %s479_s9 = sphi %s505_s9, %s635_s9   ;;  %s475_s8 = sphi %s503_s8, %s634_s8   ;;  %s471_s7 = sphi %s501_s7, %s633_s7   ;;  %s467_s6 = sphi %s499_s6, %s632_s6  }
   0x7   : > { %s29_s14 = sadd.s32 1, %s483_s10  ;;  %s38_s15 = sadd.s32 1, %s475_s8 }
   0x8   : > { %p31_p0 = scmp.ge.s32.totalorder %s29_s14, 2  ;;  %p45_p1 = scmp.ne.s32.totalorder %s475_s8, %s471_s7 }
   0x9   : > { %p46_p2 = scmp.eq.s32.totalorder %s487_s11, 0  ;;  %p51_p3 = scmp.ne.s32.totalorder %s471_s7, %s467_s6 }
   0xa   : > { %s638_s14 = smov (%p31_p0, %s29_s14), 0  ;;  %p52_p5 = scmp.eq.s32.totalorder %s292_s12, 0 }
   0xb   : > { %p540_p4 = por %p46_p2, %p45_p1  ;;  %s33_s17 = ssub.s32 %s483_s10, %s638_s14 }
   0xc   : > { %p77_p6 = scmp.eq.s32.totalorder %s292_s12, 1  ;;  %p36_p7 = scmp.eq.s32.totalorder %s33_s17, 0 }
   0xd   : > { %p546_p8 = por %p52_p5, %p51_p3  ;;  %p83_p10 = scmp.eq.s32.totalorder %s293_s13, 1 }
   0xe   : > { %p550_p9 = por %p77_p6, %p45_p1  ;;  %p295_p12 = scmp.ge.s32.totalorder %s487_s11, 2 }
   0xf   : > { %s555_s20 = scalar_select %p36_p7, %s475_s8, %s38_s15  }
  0x10   : > { %p557_p11 = por %p83_p10, %p51_p3  ;;  %p321_p13 = scmp.lt.s32.totalorder %s487_s11, 2 }
  0x11   : > { %s103_s22 = sand.u32 1, %s475_s8   ;;  %s307_s24 = sshll.u32 %s483_s10, 3 }
  0x12   : > { %s296_s23 = sshll.u32 %s103_s22, 3  ;;  %s114_s27 = scalar_lea.hbm %s626_s0, %s307_s24 }
  0x13   : > { %s107_s28 = scalar_lea.vmem [#allocation2], %s296_s23  ;;  %s116_s30 = sshll.u32 %s114_s27, 4  ;;  %s117_s30 = int_to_ptr.hbm [resolvable:$true] %s116_s30 }
  0x14   : > { %s118_s29 = sshll.u32 %s107_s28, 4  ;;  %p314_p0 = pnand %p321_p13, %p540_p4  ;;  %s119_s29 = int_to_ptr.vmem [resolvable:$true] %s118_s29 }
  0x15   : > { %p299_p1 = scmp.ge.s32.totalorder %s487_s11, 1  ;;  %p123_p2 = scmp.lt.s32.totalorder %s487_s11, 3 }
  0x16   : > { %s104_s2 = scalar_lea.sflag [#allocation3], %s103_s22 }
  0x17   : > { %316 = dma.hbm_to_vmem [thread:$0]  (!%p314_p0), %s117_s30, 128, %s119_s29, %s104_s2  }
  0x18   : > { %p124_p3 = pnand %p299_p1, %p123_p2 }
  0x19   : > { %s573_s3 = sand.u32 (!%p124_p3), 1, %s471_s7  }
  0x1a   : > { %127 = sbr.rel (%p124_p3) target bundleno = 73 (0x49), region = 24  ;;  %s300_s4 = sshll.u32 (!%p124_p3), %s573_s3, 3 }
  0x1b   : > { %s130_s5 = scalar_lea.sflag (!%p124_p3), [#allocation3], %s573_s3  ;;  %s133_s12 = scalar_lea.vmem (!%p124_p3), [#allocation2], %s300_s4 }
  0x1f   : > { %458 = dma.done.wait (%p546_p8), %s130_s5, 128  }
  0x20   : > { %460 = vsyncadd (%p546_p8), %s130_s5, 4294967168  ;;  %v155_v0 = vld [vmem:[%s133_s12] sm:$0xff]  ;;  %vm163_vm0 = vcmask 1043456   ;;  %s308_s13 = sshll.u32 %s479_s9, 3  ;;  %s152_s18 = scalar_lea.vmem [#allocation5], %s300_s4 }
  0x21   : > { %v156_v1 = vmax.f32 %v155_v0, 0.0  ;;  %s203_s17 = scalar_lea.hbm %s627_s1, %s308_s13  ;;  %s205_s22 = sshll.u32 %s152_s18, 4  ;;  %s206_s22 = int_to_ptr.vmem [resolvable:$true] %s205_s22 }
  0x22   : > { %s207_s23 = sshll.u32 %s203_s17, 4  ;;  %s190_s9 = scalar_lea.sflag [#allocation4], %s573_s3  ;;  %s208_s23 = int_to_ptr.hbm [resolvable:$true] %s207_s23 }
  0x23   : > { %158 = vst [vmem:[#allocation1] ss:$2 sm:$0xff] %v156_v1  ;;  %s419_s24 = sshra.s32 %s208_s23, 4  ;;  %s425_s28 = scalar_lea.hbm %s627_s1, 16  ;;  %s420_s24 = int_to_ptr.hbm [resolvable:$true] %s419_s24 }
  0x24   : > { %s421_s25 = scalar_lea.hbm %s420_s24, 8  ;;  %p426_p7 = scmp.lt.s32.totalorder %s420_s24, %s627_s1 }
  0x25   : > { %p422_p4 = scmp.ne.s32.totalorder %s420_s24, %s421_s25  ;;  %p427_p8 = scmp.lt.s32.totalorder %s425_s28, %s421_s25 }
  0x27   : > { %p423_p5 = pnand %p422_p4, %p550_p9  ;;  %p428_p10 = por %p427_p8, %p426_p7 }
  0x29   : > { %p424_p6 = pneg %p423_p5 }
  0x2a   : > { %v159_v2 = vld.sshfl [vmem:[#allocation1] sm:$0xff pattern:$0x75316420]  ;;  %v160_v3 = vld.sshfl [vmem:[#allocation1 + $0x8] sm:$0xff pattern:$0x75316420] }
  0x2b   : > { %v164_v4 = vsel %vm163_vm0, %v159_v2, 0.0  ;;  %v171_v5 = vsel %vm163_vm0, %v160_v3, 0.0  ;;  %p429_p13 = pnand %p428_p10, %p424_p6 }
  0x2c   : > { %v165_v6 = vrot.slane %v164_v4, 4  ;;  %v172_v7 = vrot.slane %v171_v5, 4 }
  0x2e   : > { %v166_v8 = vadd.f32 %v165_v6, %v164_v4  ;;  %v173_v9 = vadd.f32 %v172_v7, %v171_v5 }
  0x30   : > { %v167_v10 = vrot.slane %v166_v8, 2  ;;  %v174_v11 = vrot.slane %v173_v9, 2 }
  0x32   : > { %v168_v12 = vadd.f32 %v167_v10, %v166_v8  ;;  %v175_v13 = vadd.f32 %v174_v11, %v173_v9 }
  0x34   : > { %v169_v14 = vrot.slane %v168_v12, 1  ;;  %v176_v15 = vrot.slane %v175_v13, 1 }
  0x36   : > { %v170_v16 = vadd.f32 %v169_v14, %v168_v12  ;;  %v177_v17 = vadd.f32 %v176_v15, %v175_v13 }
  0x38   : > { %v179_v18 = vadd.f32 1e-08, %v177_v17  ;;  %v178_v19 = vadd.f32 1e-08, %v170_v16 }
  0x3a   : > { %371 = vrcp.f32 %v179_v18 }
  0x3b   : > { %373 = vrcp.f32 %v178_v19 }
  0x40   : > { %v372_v20 = vpop.eup %371 }
  0x41   : > { %v184_v21 = vrot.slane %v372_v20, 4  ;;  %v374_v22 = vpop.eup %373 }
  0x43   : > { %v185_v23 = vsel %vm163_vm0, %v374_v22, %v184_v21 }
  0x44   : > { %v187_v24 = vmul.f32 %v185_v23, %v156_v1 }
  0x46   : > { %188 = vst [vmem:[%s152_s18] sm:$0xff] %v187_v24 }
  0x47   : > { %432 = shalt.err (!%p429_p13)
}
  0x48   : > { %311 = dma.vmem_to_hbm [thread:$0]  (%p550_p9), %s206_s22, 128, %s208_s23, %s190_s9  }
  0x49 PF: > { %s219_s2 = sand.u32 1, %s467_s6   ;;  %p318_p0 = pnand %p295_p12, %p557_p11 }
  0x4a   : > { %s220_s3 = scalar_lea.sflag [#allocation4], %s219_s2 }
  0x4b   : > { %p319_p1 = pneg %p318_p0 }
  0x4d   : > { %462 = dma.done.wait (%p319_p1), %s220_s3, 128  }
  0x4e   : > { %464 = vsyncadd (%p319_p1), %s220_s3, 4294967168  ;;  %s17_s11 = sadd.s32 1, %s487_s11   ;;  %s632_s6 = smov %s471_s7 }
  0x4f   : > { %p14_p2 = scmp.ge.s32.totalorder %s17_s11, 4   ;;  %s633_s7 = smov %s475_s8 }
  0x50   : > { %s634_s8 = smov %s555_s20  ;;  %s635_s9 = smov %s483_s10 }
  0x51   : > { %s636_s10 = smov %s638_s14  ;;  %16 = sbr.rel (!%p14_p2) target bundleno = 6 (0x6), region = 69 }
  0x56   :  { %226 = vsyncpa [#allocation3], 1 }
  0x57   :  { %228 = vsyncpa [#allocation3 + $0x1], 1 }
  0x58   :  { %229 = vsyncpa [#allocation4], 1 }
  0x59   :  { %231 = vsyncpa [#allocation4 + $0x1], 1 }

</bundles_post_ra>
